<compile_context>
chip_gen: v7x
topology: tpu7x:2x2x1
jax: 0.10.0
libtpu: 0.0.40
codegen_flags: <defaults>
</compile_context>

<pallas_src>
import numpy as np
import jax
import jax.numpy as jnp
from jax.experimental import pallas as pl
from jax.experimental.pallas import tpu as pltpu

LANES = 128     # vreg lane width  (last dim)
SUBLANES = 8    # vreg sublane width (second-to-last dim)


def _round_up(n, m):
    return (n + m - 1) // m * m


# ----------------------------- activations ---------------------------------
def _softplus(x, beta=1.0, threshold=20.0):
    # matches torch.nn.functional.softplus(x, beta, threshold)
    bx = beta * x
    safe = jnp.where(bx > threshold, 0.0, bx)
    return jnp.where(bx > threshold, x, (1.0 / beta) * jnp.log1p(jnp.exp(safe)))


def make_activation(name):
    """Subset of FullyConnectedNetwork.activation_function used here."""
    if name == "identity":
        return lambda x: x
    if name == "relu":
        return lambda x: jnp.maximum(x, 0.0)
    if name == "tanh":
        return jnp.tanh
    if name == "sigmoid":
        return jax.nn.sigmoid
    if name == "softplus":
        return lambda x: _softplus(x)
    if name == "softplustransformed":
        # SoftPlusTransformed defaults: intercept_ordinate=0.6931, bias=0.0
        beta = float(np.log(2.0) / 0.6931)
        return lambda x: _softplus(x, beta=beta, threshold=20.0)
    raise ValueError(f"activation {name} not supported")


_GAINS = {"relu": float(np.sqrt(2.0)), "tanh": 5.0 / 3.0}   # others fall back to 1.0


# ------------------------------ parameters ----------------------------------
def init_linear(key, fan_in, fan_out, gain):
    """xavier_uniform_ weight (stored transposed as (in,out)) + torch-default bias."""
    kw, kb = jax.random.split(key)
    w_bound = gain * np.sqrt(6.0 / (fan_in + fan_out))
    w = jax.random.uniform(kw, (fan_in, fan_out), jnp.float32, -w_bound, w_bound)
    b_bound = 1.0 / np.sqrt(fan_in)
    b = jax.random.uniform(kb, (1, fan_out), jnp.float32, -b_bound, b_bound)
    return w, b


def init_mlp_params(key, d_in, n_features, d_out, activations):
    dims = [d_in] + list(n_features) + [d_out]
    keys = jax.random.split(key, len(dims) - 1)
    return [init_linear(keys[i], dims[i], dims[i + 1], _GAINS.get(activations[i], 1.0))
            for i in range(len(dims) - 1)]


# --------------------------- host-side head fusion ---------------------------
def pack_heads(params_mu, params_sigma):
    """Fuse the two heads into one weight slab + one bias slab (lane-dense).

    Returns:
      w_slab  : (sum(row_sizes), C) f32, C = 128-multiple
      b_slab  : (8, C) f32            (row l = fused bias of layer l)
      row_offsets, row_sizes : per-layer static row windows into w_slab
      C, mu_out_cols
    """
    n_layers = len(params_mu)
    assert len(params_sigma) == n_layers
    d_in = params_mu[0][0].shape[0]
    assert params_sigma[0][0].shape[0] == d_in

    fused_widths = [params_mu[l][0].shape[1] + params_sigma[l][0].shape[1]
                    for l in range(n_layers)]
    C = _round_up(max(fused_widths), LANES)

    row_sizes = [_round_up(d_in, SUBLANES)] + [C] * (n_layers - 1)
    row_offsets = [int(v) for v in np.cumsum([0] + row_sizes[:-1])]

    w_slab = np.zeros((int(sum(row_sizes)), C), np.float32)
    b_slab = np.zeros((_round_up(n_layers, SUBLANES), C), np.float32)

    for l in range(n_layers):
        wmu, bmu = (np.asarray(a) for a in params_mu[l])
        wsg, bsg = (np.asarray(a) for a in params_sigma[l])
        r0 = row_offsets[l]
        cmu, csg = wmu.shape[1], wsg.shape[1]
        if l == 0:
            # both heads consume the same input rows -> column concat
            w_slab[r0:r0 + d_in, :cmu] = wmu
            w_slab[r0:r0 + d_in, cmu:cmu + csg] = wsg
        else:
            # block-diagonal: head rows align with that head's previous-layer columns
            prev_cmu = params_mu[l - 1][0].shape[1]
            w_slab[r0:r0 + wmu.shape[0], :cmu] = wmu
            w_slab[r0 + prev_cmu:r0 + prev_cmu + wsg.shape[0], cmu:cmu + csg] = wsg
        b_slab[l, :cmu] = bmu.reshape(-1)
        b_slab[l, cmu:cmu + csg] = bsg.reshape(-1)

    mu_out_cols = params_mu[-1][0].shape[1]
    return (jnp.asarray(w_slab), jnp.asarray(b_slab),
            row_offsets, row_sizes, C, mu_out_cols)


# ------------------------------- kernel --------------------------------------
def make_double_gaussian_kernel(row_offsets, row_sizes, hidden_acts,
                                final_mu_name, final_sigma_name, mu_out_cols):
    n_layers = len(row_sizes)
    hidden_fns = [make_activation(a) for a in hidden_acts]
    final_mu = make_activation(final_mu_name)
    final_sigma = make_activation(final_sigma_name)
    same_final = (final_mu_name == final_sigma_name)

    def kernel(x_ref, w_ref, b_ref, o_ref):
        z = x_ref[...]
        for l in range(n_layers):
            w = w_ref[row_offsets[l]:row_offsets[l] + row_sizes[l], :]  # static, 8-aligned
            z = jnp.dot(z, w, preferred_element_type=jnp.float32) + b_ref[l:l + 1, :]
            if l < n_layers - 1:
                z = hidden_fns[l](z)  # full-width: padded/zero lanes are harmless
        if same_final:
            y = final_mu(z)
        else:
            # one fused pass; select per column-block (mu cols first, then sigma cols)
            col = jax.lax.broadcasted_iota(jnp.int32, z.shape, dimension=1)
            y = jnp.where(col < mu_out_cols, final_mu(z), final_sigma(z))
        o_ref[...] = y.astype(o_ref.dtype)   # lane-dense (TB, 128) store

    return kernel


# ------------------------------- wrapper --------------------------------------
def double_gaussian_forward(x, params_mu, params_sigma, acts_mu, acts_sigma):
    # DoubleGaussianNet.forward: concat([net_mu(x), net_log_sigma(x)], dim=1).
    # Hidden activations must match across heads for the fused block-diag form.
    assert tuple(acts_mu[:-1]) == tuple(acts_sigma[:-1]), \
        "fused kernel requires identical hidden activations across heads"
    x = x.astype(jnp.float32)
    B, d_in = x.shape

    w_slab, b_slab, row_offsets, row_sizes, C, mu_out_cols = pack_heads(
        params_mu, params_sigma)
    d_out_total = mu_out_cols + params_sigma[-1][0].shape[1]

    # pad batch / feature dims to tile boundaries
    tb = min(128, _round_up(B, SUBLANES))
    B_pad = _round_up(B, tb)
    d_in_pad = row_sizes[0]
    x_pad = jnp.zeros((B_pad, d_in_pad), jnp.float32).at[:B, :d_in].set(x)

    kernel = make_double_gaussian_kernel(row_offsets, row_sizes,
                                         acts_mu[:-1], acts_mu[-1], acts_sigma[-1],
                                         mu_out_cols)

    n_transc_layers = sum(1 for a in acts_mu
                          if a in ("tanh", "sigmoid", "softplus", "softplustransformed"))
    cost = pl.CostEstimate(
        flops=2 * B_pad * sum(rs * C for rs in row_sizes),
        transcendentals=B_pad * C * n_transc_layers,
        bytes_accessed=4 * (x_pad.size + w_slab.size + b_slab.size + B_pad * C),
    )

    out = pl.pallas_call(
        kernel,
        out_shape=jax.ShapeDtypeStruct((B_pad, C), jnp.float32),
        grid_spec=pltpu.PrefetchScalarGridSpec(
            num_scalar_prefetch=0,
            grid=(B_pad // tb,),
            in_specs=[
                pl.BlockSpec((tb, d_in_pad), lambda i: (i, 0)),       # x tile
                pl.BlockSpec(w_slab.shape, lambda i: (0, 0)),         # weight slab (resident)
                pl.BlockSpec(b_slab.shape, lambda i: (0, 0)),         # bias slab (resident)
            ],
            out_specs=pl.BlockSpec((tb, C), lambda i: (i, 0)),
        ),
        compiler_params=pltpu.CompilerParams(dimension_semantics=("parallel",)),
        cost_estimate=cost,
    )(x_pad, w_slab, b_slab)

    # lane-dense kernel output -> (B, d_out_mu + d_out_sigma) == torch.concat(dim=1)
    return out[:B, :d_out_total]


# ------------------------------ reference ------------------------------------
def _mlp_ref(x, params, act_names):
    z = x
    for (w, b), name in zip(params, act_names):
        z = make_activation(name)(z @ w + b)
    return z


def double_gaussian_reference(x, params_mu, params_sigma, acts_mu, acts_sigma):
    x = x.astype(jnp.float32)
    mu = _mlp_ref(x, params_mu, acts_mu)
    log_sigma = _mlp_ref(x, params_sigma, acts_sigma)
    return jnp.concatenate([mu, log_sigma], axis=1)


# --------------------------------- main ---------------------------------------
if __name__ == "__main__":
    key = jax.random.PRNGKey(0)
    k_x, k_mu, k_sg = jax.random.split(key, 3)

    B, D_IN, HIDDEN, D_OUT = 8, 16, [32, 32], 4
    ACTS_MU = ("relu", "relu", "identity")         # net_mu
    ACTS_SIGMA = ("relu", "relu", "identity")      # net_log_sigma

    x = jax.random.normal(k_x, (B, D_IN), dtype=jnp.float32)
    params_mu = init_mlp_params(k_mu, D_IN, HIDDEN, D_OUT, ACTS_MU)
    params_sigma = init_mlp_params(k_sg, D_IN, HIDDEN, D_OUT, ACTS_SIGMA)

    out = double_gaussian_forward(x, params_mu, params_sigma, ACTS_MU, ACTS_SIGMA)
    out = jax.block_until_ready(out)

    ref = double_gaussian_reference(x, params_mu, params_sigma, ACTS_MU, ACTS_SIGMA)
    assert out.shape == (B, 2 * D_OUT), out.shape
    np.testing.assert_allclose(np.asarray(out), np.asarray(ref), rtol=1e-5, atol=1e-5)

    print("KERNEL_OK")
</pallas_src>

<mosaic_0001>
module attributes {stable_mosaic.version = 11 : i64} {
  func.func @kernel(%arg0: i32, %arg1: memref<8x16xf32, #tpu.memory_space<vmem>>, %arg2: memref<272x128xf32, #tpu.memory_space<vmem>>, %arg3: memref<8x128xf32, #tpu.memory_space<vmem>>, %arg4: memref<8x128xf32, #tpu.memory_space<vmem>>) attributes {dimension_semantics = [#tpu.dimension_semantics<parallel>], iteration_bounds = array<i64: 1>, scalar_prefetch = 0 : i64, scratch_operands = 0 : i64, tpu.core_type = #tpu.core_type<tc>, window_params = [{transform_indices = @transform_0, window_bounds = array<i64: 8, 16>}, {pipeline_mode = #tpu.pipeline_mode<synchronous>, transform_indices = @transform_1, window_bounds = array<i64: 272, 128>}, {pipeline_mode = #tpu.pipeline_mode<synchronous>, transform_indices = @transform_2, window_bounds = array<i64: 8, 128>}, {transform_indices = @transform_3, window_bounds = array<i64: 8, 128>}]} {
    %c0 = arith.constant 0 : index
    %c0_0 = arith.constant 0 : index
    %0 = vector.load %arg1[%c0, %c0_0] : memref<8x16xf32, #tpu.memory_space<vmem>>, vector<8x16xf32>
    %c0_1 = arith.constant 0 : index
    %c0_2 = arith.constant 0 : index
    %1 = vector.load %arg2[%c0_1, %c0_2] : memref<272x128xf32, #tpu.memory_space<vmem>>, vector<16x128xf32>
    %cst = arith.constant dense<0.000000e+00> : vector<8x128xf32>
    %2 = tpu.matmul %0, %1, %cst {dimension_numbers = #tpu.dot_dimension_numbers<[1], [0], [0], [1], [0, 0, 1, 1], [], []>} : vector<8x16xf32>, vector<16x128xf32>, vector<8x128xf32> -> vector<8x128xf32>
    %c0_3 = arith.constant 0 : index
    %c0_4 = arith.constant 0 : index
    %3 = vector.load %arg3[%c0_3, %c0_4] : memref<8x128xf32, #tpu.memory_space<vmem>>, vector<1x128xf32>
    %4 = vector.broadcast %3 : vector<1x128xf32> to vector<8x128xf32>
    %5 = arith.addf %2, %4 : vector<8x128xf32>
    %cst_5 = arith.constant 0.000000e+00 : f32
    %6 = vector.broadcast %cst_5 : f32 to vector<8x128xf32>
    %7 = arith.maximumf %5, %6 : vector<8x128xf32>
    %c16 = arith.constant 16 : index
    %c0_6 = arith.constant 0 : index
    %8 = vector.load %arg2[%c16, %c0_6] : memref<272x128xf32, #tpu.memory_space<vmem>>, vector<128x128xf32>
    %cst_7 = arith.constant dense<0.000000e+00> : vector<8x128xf32>
    %9 = tpu.matmul %7, %8, %cst_7 {dimension_numbers = #tpu.dot_dimension_numbers<[1], [0], [0], [1], [0, 0, 1, 1], [], []>} : vector<8x128xf32>, vector<128x128xf32>, vector<8x128xf32> -> vector<8x128xf32>
    %c1 = arith.constant 1 : index
    %c0_8 = arith.constant 0 : index
    %10 = vector.load %arg3[%c1, %c0_8] : memref<8x128xf32, #tpu.memory_space<vmem>>, vector<1x128xf32>
    %11 = vector.broadcast %10 : vector<1x128xf32> to vector<8x128xf32>
    %12 = arith.addf %9, %11 : vector<8x128xf32>
    %cst_9 = arith.constant 0.000000e+00 : f32
    %13 = vector.broadcast %cst_9 : f32 to vector<8x128xf32>
    %14 = arith.maximumf %12, %13 : vector<8x128xf32>
    %c144 = arith.constant 144 : index
    %c0_10 = arith.constant 0 : index
    %15 = vector.load %arg2[%c144, %c0_10] : memref<272x128xf32, #tpu.memory_space<vmem>>, vector<128x128xf32>
    %cst_11 = arith.constant dense<0.000000e+00> : vector<8x128xf32>
    %16 = tpu.matmul %14, %15, %cst_11 {dimension_numbers = #tpu.dot_dimension_numbers<[1], [0], [0], [1], [0, 0, 1, 1], [], []>} : vector<8x128xf32>, vector<128x128xf32>, vector<8x128xf32> -> vector<8x128xf32>
    %c2 = arith.constant 2 : index
    %c0_12 = arith.constant 0 : index
    %17 = vector.load %arg3[%c2, %c0_12] : memref<8x128xf32, #tpu.memory_space<vmem>>, vector<1x128xf32>
    %18 = vector.broadcast %17 : vector<1x128xf32> to vector<8x128xf32>
    %19 = arith.addf %16, %18 : vector<8x128xf32>
    %c0_13 = arith.constant 0 : index
    %c0_14 = arith.constant 0 : index
    %20 = vector.load %arg4[%c0_13, %c0_14] : memref<8x128xf32, #tpu.memory_space<vmem>>, vector<8x128xf32>
    tpu.vector_store %arg4[%c0_13, %c0_14], %19 {strides = array<i32>} : memref<8x128xf32, #tpu.memory_space<vmem>>, vector<8x128xf32>,
    return
  }
  func.func @transform_0(%arg0: i32) -> (i32, i32) {
    %c0_i32 = arith.constant 0 : i32
    %c0_i32_0 = arith.constant 0 : i32
    return %arg0, %c0_i32 : i32, i32
  }
  func.func @transform_1(%arg0: i32) -> (i32, i32) {
    %c0_i32 = arith.constant 0 : i32
    %c0_i32_0 = arith.constant 0 : i32
    %c0_i32_1 = arith.constant 0 : i32
    return %c0_i32, %c0_i32_0 : i32, i32
  }
  func.func @transform_2(%arg0: i32) -> (i32, i32) {
    %c0_i32 = arith.constant 0 : i32
    %c0_i32_0 = arith.constant 0 : i32
    %c0_i32_1 = arith.constant 0 : i32
    return %c0_i32, %c0_i32_0 : i32, i32
  }
  func.func @transform_3(%arg0: i32) -> (i32, i32) {
    %c0_i32 = arith.constant 0 : i32
    %c0_i32_0 = arith.constant 0 : i32
    return %arg0, %c0_i32 : i32, i32
  }
}

</mosaic_0001>

<bundles_post_ra>
// kernel: tpu_custom_call.1
= control target key start
LH: loop header
LB: loop body
LE: loop exit
PB: predicated region body
PF: predicated region fallthrough
CT: control target
= control target key end

     0   :  { %8 = vsyncpa [#allocation3], 0  ;;  %s704_s0 = inlined_call_operand.hbm [shape: f32[8,16], index: 0, kind: input, shape index: {}]   ;;  %s705_s1 = inlined_call_operand.hbm [shape: f32[272,128], index: 1, kind: input, shape index: {}]   ;;  %s706_s2 = inlined_call_operand.hbm [shape: f32[8,128], index: 2, kind: input, shape index: {}]   ;;  %s707_s3 = inlined_call_operand.hbm [shape: f32[8,128], index: 3, kind: output, shape index: {}]  }
   0x1   :  { %9 = vsyncpa [#allocation6], 0 }
   0x2   :  { %10 = vsyncpa [#allocation4], 0  ;;  %s607_s12 = smov [#allocation5]   ;;  %s513_s16 = scalar_lea.hbm %s705_s1, 4352 }
   0x3   :  { %s26_s13 = sshll.u32 %s607_s12, 4  ;;  %p514_p0 = scmp.ne.s32.totalorder %s705_s1, %s513_s16  ;;  %s27_s13 = int_to_ptr.vmem [resolvable:$true] %s26_s13 }
   0x4   :  { %p517_p1 = scmp.lt.u32.totalorder %s513_s16, %s705_s1 }
   0x6   :  { %p519_p2 = pnand %p517_p1, %p514_p0 }
   0x8   :  { %522 = shalt.err (!%p519_p2)
}
   0x9   :  { %s523_s21 = scalar_lea.vmem %s27_s13, 4352  ;;  %p528_p4 = scmp.lt.s32.totalorder %s27_s13, %s27_s13 }
   0xa   :  { %p524_p3 = scmp.ne.s32.totalorder %s27_s13, %s523_s21  ;;  %p529_p5 = scmp.lt.s32.totalorder %s523_s21, %s523_s21 }
   0xc   :  { %p530_p6 = por %p529_p5, %p528_p4 }
   0xe   :  { %p531_p7 = pnand %p530_p6, %p524_p3 }
  0x10   :  { %534 = shalt.err (!%p531_p7)
}
  0x11   :  { %s608_s22 = smov 128   ;;  %s609_s23 = smov 8  }
  0x12   :  { %32 = dma.hbm_to_vmem [thread:$0]  %s705_s1, 4352, %s27_s13, [#allocation6], %s608_s22, %s608_s22, %s609_s23  }
  0x13   :  { %s610_s26 = smov [#allocation2]   ;;  %s611_s28 = smov [#allocation7]  }
  0x14   :  { %s17_s27 = sshll.u32 %s610_s26, 4  ;;  %s39_s29 = sshll.u32 %s611_s28, 4  ;;  %s18_s27 = int_to_ptr.vmem [resolvable:$true] %s17_s27  ;;  %s40_s29 = int_to_ptr.vmem [resolvable:$true] %s39_s29 }
  0x15   :  { %s535_s5 = scalar_lea.hbm %s704_s0, 128 }
  0x16   :  { %p536_p8 = scmp.ne.s32.totalorder %s704_s0, %s535_s5  ;;  %p539_p9 = scmp.lt.u32.totalorder %s535_s5, %s704_s0 }
  0x18   :  { %p541_p10 = pnand %p539_p9, %p536_p8 }
  0x1a   :  { %544 = shalt.err (!%p541_p10)
}
  0x1b   :  { %s545_s1 = scalar_lea.vmem %s18_s27, 128  ;;  %p550_p12 = scmp.lt.s32.totalorder %s18_s27, %s18_s27 }
  0x1c   :  { %p546_p11 = scmp.ne.s32.totalorder %s18_s27, %s545_s1  ;;  %p551_p13 = scmp.lt.s32.totalorder %s545_s1, %s545_s1 }
  0x1e   :  { %p552_p0 = por %p551_p13, %p550_p12 }
  0x20   :  { %p553_p1 = pnand %p552_p0, %p546_p11 }
  0x22   :  { %556 = shalt.err (!%p553_p1)
}
  0x23   :  { %20 = dma.hbm_to_vmem [thread:$0]  %s704_s0, 128, %s18_s27, [#allocation3]  }
  0x24   :  { %s557_s14 = scalar_lea.hbm %s706_s2, 128 }
  0x25   :  { %p558_p2 = scmp.ne.s32.totalorder %s706_s2, %s557_s14  ;;  %p561_p3 = scmp.lt.u32.totalorder %s557_s14, %s706_s2 }
  0x27   :  { %p563_p4 = pnand %p561_p3, %p558_p2 }
  0x29   :  { %566 = shalt.err (!%p563_p4)
}
  0x2a   :  { %s567_s19 = scalar_lea.vmem %s40_s29, 128  ;;  %p572_p6 = scmp.lt.s32.totalorder %s40_s29, %s40_s29 }
  0x2b   :  { %p568_p5 = scmp.ne.s32.totalorder %s40_s29, %s567_s19  ;;  %p573_p7 = scmp.lt.s32.totalorder %s567_s19, %s567_s19 }
  0x2d   :  { %p574_p8 = por %p573_p7, %p572_p6 }
  0x2f   :  { %p575_p9 = pnand %p574_p8, %p568_p5 }
  0x31   :  { %578 = shalt.err (!%p575_p9)
}
  0x32   :  { %42 = dma.hbm_to_vmem [thread:$0]  %s706_s2, 128, %s40_s29, [#allocation6]  }
  0x33   :  { %601 = dma.done.wait [#allocation3], 128  }
  0x34   :  { %602 = vsyncadd [#allocation3], 4294967168 }
  0x35   :  { %603 = dma.done.wait [#allocation6], 4480  }
  0x36   :  { %604 = vsyncadd [#allocation6], 4294962816  ;;  %v612_v0 = vmov 0.0|0.0   ;;  %vm613_vm0 = vmmov 0   ;;  %v614_v1 = vmov 0.0   ;;  %v53_v2 = vld [vmem:[#allocation5] sm:$0xff] }
  0x37   :  { %453 = vmatprep.subr.bf16.mxu0 %v612_v0  ;;  %380 = vmatprep.mubr.msk.f32.mxu0 %vm613_vm0, %v614_v1  ;;  %v54_v3 = vld [vmem:[#allocation5 + $0x8] sm:$0xff]  ;;  %v135_v5 = vld [vmem:[#allocation5 + $0x10] sm:$0xff]  ;;  %v136_v6 = vld [vmem:[#allocation5 + $0x18] sm:$0xff]  ;;  %vm60_vm1 = vcmask 130048   ;;  %s615_s2 = smov [#allocation8]  }
  0x38   :  { %456 = vmatprep.subr.bf16.mxu1 %v612_v0  ;;  %415 = vmatprep.mubr.msk.f32.mxu1 %vm613_vm0, %v614_v1  ;;  %v454_v4 = vpack.c.bf16 %v54_v3, %v53_v2  ;;  %v137_v7 = vld [vmem:[#allocation5 + $0x20] sm:$0xff]  ;;  %v457_v8 = vpack.c.bf16 %v136_v6, %v135_v5  ;;  %v138_v9 = vld [vmem:[#allocation5 + $0x28] sm:$0xff]  ;;  %v52_v10 = vld [vmem:[#allocation2] sm:$0xff]  ;;  %s325_s21 = sshll.u32 %s615_s2, 4  ;;  %s326_s21 = int_to_ptr.vmem [resolvable:$true] %s325_s21 }
  0x39   :  { %v460_v11 = vpack.c.bf16 %v138_v9, %v137_v7  ;;  %v139_v12 = vld [vmem:[#allocation5 + $0x30] sm:$0xff]  ;;  %v140_v13 = vld [vmem:[#allocation5 + $0x38] sm:$0xff]  ;;  %v141_v15 = vld [vmem:[#allocation5 + $0x40] sm:$0xff]  ;;  %s579_s22 = scalar_lea.vmem %s326_s21, 128  ;;  %p584_p11 = scmp.lt.s32.totalorder %s326_s21, %s326_s21 }
  0x3a   :  { %455 = vmatpush3.bf16.msra.mxu0 %v454_v4  ;;  %458 = vmatpush3.bf16.msra.mxu1 %v457_v8  ;;  %v463_v14 = vpack.c.bf16 %v140_v13, %v139_v12  ;;  %v142_v16 = vld [vmem:[#allocation5 + $0x48] sm:$0xff]  ;;  %v143_v18 = vld [vmem:[#allocation5 + $0x50] sm:$0xff]  ;;  %v144_v19 = vld [vmem:[#allocation5 + $0x58] sm:$0xff]  ;;  %p580_p10 = scmp.ne.s32.totalorder %s326_s21, %s579_s22  ;;  %p585_p12 = scmp.lt.s32.totalorder %s579_s22, %s579_s22 }
  0x3b   :  { %480 = vmatprep.subr.bf16.mxu0 %v612_v0  ;;  %459 = vmatprep.subr.bf16.mxu1 %v612_v0  ;;  %v466_v17 = vpack.c.bf16 %v142_v16, %v141_v15  ;;  %v469_v20 = vpack.c.bf16 %v144_v19, %v143_v18  ;;  %v145_v21 = vld [vmem:[#allocation5 + $0x60] sm:$0xff]  ;;  %v146_v22 = vld [vmem:[#allocation5 + $0x68] sm:$0xff]  ;;  %v147_v24 = vld [vmem:[#allocation5 + $0x70] sm:$0xff] }
  0x3c   :  { %v472_v23 = vpack.c.bf16 %v146_v22, %v145_v21  ;;  %v148_v25 = vld [vmem:[#allocation5 + $0x78] sm:$0xff]  ;;  %v149_v27 = vld [vmem:[#allocation5 + $0x80] sm:$0xff]  ;;  %v150_v28 = vld [vmem:[#allocation5 + $0x88] sm:$0xff]  ;;  %p586_p13 = por %p585_p12, %p584_p11 }
  0x3d   :  { %381 = vmatmul.mubr.msk.f32.vlgmr.msra.gmra.mrb[0].mxu0 %vm60_vm1, %v52_v10  ;;  %v475_v26 = vpack.c.bf16 %v148_v25, %v147_v24  ;;  %v478_v29 = vpack.c.bf16 %v150_v28, %v149_v27  ;;  %v227_v30 = vld [vmem:[#allocation5 + $0x90] sm:$0xff]  ;;  %v228_v31 = vld [vmem:[#allocation5 + $0x98] sm:$0xff]  ;;  %v229_v32 = vld [vmem:[#allocation5 + $0xa0] sm:$0xff] }
  0x3e   :  { %450 = vmatprep.mubr.msk.f32.mxu0 %vm613_vm0, %v614_v1  ;;  %461 = vmatpush3.bf16.msra.mxu1 %v460_v11  ;;  %v481_v33 = vpack.c.bf16 %v228_v31, %v227_v30  ;;  %v230_v34 = vld [vmem:[#allocation5 + $0xa8] sm:$0xff]  ;;  %v231_v36 = vld [vmem:[#allocation5 + $0xb0] sm:$0xff]  ;;  %v232_v37 = vld [vmem:[#allocation5 + $0xb8] sm:$0xff]  ;;  %p587_p0 = pnand %p586_p13, %p580_p10 }
  0x3f   :  { %462 = vmatprep.subr.bf16.mxu1 %v612_v0  ;;  %v484_v35 = vpack.c.bf16 %v230_v34, %v229_v32  ;;  %v487_v38 = vpack.c.bf16 %v232_v37, %v231_v36  ;;  %v233_v39 = vld [vmem:[#allocation5 + $0xc0] sm:$0xff]  ;;  %v234_v40 = vld [vmem:[#allocation5 + $0xc8] sm:$0xff]  ;;  %v235_v42 = vld [vmem:[#allocation5 + $0xd0] sm:$0xff] }
  0x40   :  { %482 = vmatpush3.bf16.msra.mxu0 %v481_v33  ;;  %v490_v41 = vpack.c.bf16 %v234_v40, %v233_v39  ;;  %v236_v43 = vld [vmem:[#allocation5 + $0xd8] sm:$0xff]  ;;  %v237_v45 = vld [vmem:[#allocation5 + $0xe0] sm:$0xff]  ;;  %v238_v46 = vld [vmem:[#allocation5 + $0xe8] sm:$0xff] }
  0x41   :  { %483 = vmatprep.subr.bf16.mxu0 %v612_v0  ;;  %v493_v44 = vpack.c.bf16 %v236_v43, %v235_v42  ;;  %v496_v47 = vpack.c.bf16 %v238_v46, %v237_v45  ;;  %v239_v48 = vld [vmem:[#allocation5 + $0xf0] sm:$0xff]  ;;  %v240_v49 = vld [vmem:[#allocation5 + $0xf8] sm:$0xff]  ;;  %v241_v56 = vld [vmem:[#allocation5 + $0x100] sm:$0xff] }
  0x42   :  { %464 = vmatpush3.bf16.msra.mxu1 %v463_v14  ;;  %v499_v50 = vpack.c.bf16 %v240_v49, %v239_v48  ;;  %v335_v51 = vld [vmem:[#allocation7] ss:$0 sm:$0xff]  ;;  %v242_v57 = vld [vmem:[#allocation5 + $0x108] sm:$0xff]  ;;  %v337_v59 = vld [vmem:[#allocation7 + $0x1] ss:$0 sm:$0xff] }
  0x43   :  { %465 = vmatprep.subr.bf16.mxu1 %v612_v0  ;;  %v502_v58 = vpack.c.bf16 %v242_v57, %v241_v56  ;;  %v338_v1 = vld [vmem:[#allocation7 + $0x2] ss:$0 sm:$0xff] }
  0x44   :  { %485 = vmatpush3.bf16.msra.mxu0 %v484_v35 }
  0x45   :  { %486 = vmatprep.subr.bf16.mxu0 %v612_v0 }
  0x46   :  { %467 = vmatpush3.bf16.msra.mxu1 %v466_v17 }
  0x47   :  { %468 = vmatprep.subr.bf16.mxu1 %v612_v0 }
  0x48   :  { %488 = vmatpush3.bf16.msra.mxu0 %v487_v38 }
  0x49   :  { %489 = vmatprep.subr.bf16.mxu0 %v612_v0 }
  0x4a   :  { %470 = vmatpush3.bf16.msra.mxu1 %v469_v20 }
  0x4b   :  { %471 = vmatprep.subr.bf16.mxu1 %v612_v0 }
  0x4c   :  { %491 = vmatpush3.bf16.msra.mxu0 %v490_v41 }
  0x4d   :  { %492 = vmatprep.subr.bf16.mxu0 %v612_v0 }
  0x4e   :  { %473 = vmatpush3.bf16.msra.mxu1 %v472_v23 }
  0x4f   :  { %474 = vmatprep.subr.bf16.mxu1 %v612_v0 }
  0x50   :  { %494 = vmatpush3.bf16.msra.mxu0 %v493_v44 }
  0x51   :  { %495 = vmatprep.subr.bf16.mxu0 %v612_v0 }
  0x52   :  { %476 = vmatpush3.bf16.msra.mxu1 %v475_v26 }
  0x53   :  { %477 = vmatprep.subr.bf16.mxu1 %v612_v0 }
  0x54   :  { %497 = vmatpush3.bf16.msra.mxu0 %v496_v47 }
  0x55   :  { %498 = vmatprep.subr.bf16.mxu0 %v612_v0 }
  0x56   :  { %479 = vmatpush3.bf16.msra.mxu1 %v478_v29 }
  0x58   :  { %500 = vmatpush3.bf16.msra.mxu0 %v499_v50 }
  0x59   :  { %501 = vmatprep.subr.bf16.mxu0 %v612_v0 }
  0x5c   :  { %503 = vmatpush3.bf16.msra.mxu0 %v502_v58 }
 0x110   :  { %v130_v52 = vpop.f32.mrb[0].mxu0 }
 0x111   :  { %v131_v53 = vadd.f32 %v335_v51, %v130_v52  ;;  %v382_v54 = vpop.f32.mrb[1].mxu0 }
 0x113   :  { %v134_v55 = vmax.f32 %v131_v53, 0.0 }
 0x115   :  { %416 = vmatmul.mubr.f32.vlgmr.msra.gmra.mrb[0].mxu1 %v134_v55 }
 0x1e8   :  { %v222_v60 = vpop.f32.mrb[0].mxu1 }
 0x1e9   :  { %v223_v61 = vadd.f32 %v337_v59, %v222_v60  ;;  %v417_v62 = vpop.f32.mrb[1].mxu1 }
 0x1eb   :  { %v226_v63 = vmax.f32 %v223_v61, 0.0 }
 0x1ed   :  { %451 = vmatmul.mubr.f32.vlgmr.msra.gmra.mrb[2].mxu0 %v226_v63 }
 0x2c0   :  { %v314_v0 = vpop.f32.mrb[2].mxu0 }
 0x2c1   :  { %v315_v2 = vadd.f32 %v338_v1, %v314_v0  ;;  %v452_v3 = vpop.f32.mrb[3].mxu0 }
 0x2c3   :  { %318 = vst [vmem:[#allocation8] sm:$0xff] %v315_v2 }
 0x2c4   :  { %590 = shalt.err (!%p587_p0)
}
 0x2c5   :  { %s591_s25 = scalar_lea.hbm %s707_s3, 128 }
 0x2c6   :  { %p592_p1 = scmp.ne.s32.totalorder %s707_s3, %s591_s25  ;;  %p595_p2 = scmp.lt.u32.totalorder %s591_s25, %s707_s3 }
 0x2c8   :  { %p597_p3 = pnand %p595_p2, %p592_p1 }
 0x2ca   :  { %600 = shalt.err (!%p597_p3)
}
 0x2cb   :  { %328 = dma.vmem_to_hbm [thread:$0]  %s326_s21, 128, %s707_s3, [#allocation4]  }
 0x2cc   :  { %605 = dma.done.wait [#allocation4], 128  }
 0x2cd   :  { %606 = vsyncadd [#allocation4], 4294967168 }
 0x2ce   :  { %332 = vsyncpa [#allocation3], 1 }
 0x2cf   :  { %333 = vsyncpa [#allocation6], 1 }
 0x2d0   :  { %334 = vsyncpa [#allocation4], 1 }

</bundles_post_ra>
